<compile_context>
chip_gen: v7x
topology: tpu7x:2x2x1
jax: 0.10.0
libtpu: 0.0.40
codegen_flags: <defaults>
</compile_context>

<pallas_src>
import functools

import numpy as np
import jax
import jax.numpy as jnp
from jax import lax
from jax.experimental import pallas as pl
from jax.experimental.pallas import tpu as pltpu


def _cpl_kernel(old_ref, newt_ref, out_ref, m_ref, l_ref, diag_ref, *,
                tau, n_valid, has_padding):
    """One (row-tile i, col-tile j) step of the contrastive prototype loss.

    old_ref  : (TM, D)  old prototypes, row tile i            (native dtype)
    newt_ref : (D, TN)  new prototypes, transposed, col tile j (native dtype)
    out_ref  : (TM, 1)  per-row loss (written on the last column step)
    m_ref    : (TM, 1)  running row max          (VMEM scratch, f32)
    l_ref    : (TM, 1)  running row sum-of-exp   (VMEM scratch, f32)
    diag_ref : (TM, 1)  positive (diagonal) term (VMEM scratch, f32)
    """
    i = pl.program_id(0)
    j = pl.program_id(1)
    last_j = pl.num_programs(1) - 1

    @pl.when(j == 0)
    def _init():
        m_ref[...] = jnp.full_like(m_ref, -1e30)
        l_ref[...] = jnp.zeros_like(l_ref)
        diag_ref[...] = jnp.zeros_like(diag_ref)

    # sim[r, c] = tau * <old_r, new_c>  — MXU, f32 accumulation, RHS already laid out (D, TN).
    sim = lax.dot_general(
        old_ref[...], newt_ref[...],
        dimension_numbers=(((1,), (0,)), ((), ())),
        preferred_element_type=jnp.float32,
    ) * tau                                                     # (TM, TN) f32

    tm, tn = sim.shape

    def online_update(z):
        m_prev = m_ref[...]
        m_new = jnp.maximum(m_prev, jnp.max(z, axis=1, keepdims=True))
        l_ref[...] = (jnp.exp(m_prev - m_new) * l_ref[...]
                      + jnp.sum(jnp.exp(z - m_new), axis=1, keepdims=True))
        m_ref[...] = m_new

    # Only the diagonal tile (i == j; square tiles enforced in the wrapper) and — when the
    # class count was padded up — the last column tile need any per-element masking.
    if has_padding:
        needs_mask = jnp.logical_or(i == j, j == last_j)
    else:
        needs_mask = i == j

    @pl.when(needs_mask)
    def _masked_step():
        row = lax.broadcasted_iota(jnp.int32, (tm, tn), 0)
        col = lax.broadcasted_iota(jnp.int32, (tm, tn), 1)

        # Positive term straight from the MXU output (no separate (TM, D) input stream).
        @pl.when(i == j)
        def _grab_diag():
            diag_ref[...] = jnp.sum(jnp.where(row == col, sim, 0.0),
                                    axis=1, keepdims=True)

        # Reference: sim * ~diag_mask  -> diagonal becomes exactly 0 (still inside logsumexp).
        on_diag = jnp.logical_and(i == j, row == col)
        z = jnp.where(on_diag, 0.0, sim)
        if has_padding:
            # Padded columns never participate; this is a no-op on non-last column tiles.
            z = jnp.where(col < (n_valid - j * tn), z, -1e30)
        online_update(z)

    @pl.when(jnp.logical_not(needs_mask))
    def _fast_step():
        online_update(sim)

    @pl.when(j == last_j)
    def _finalize():
        # per-row loss = logsumexp_row(masked sim) - sim[r, r]
        out_ref[...] = m_ref[...] + jnp.log(l_ref[...]) - diag_ref[...]


def contrastive_prototype_loss(prototype_old, prototype_new, tau, *,
                               tile=256, cast_to_bf16=False):
    """Matches ContrastivePrototypeLoss(tau).forward(prototype_old, prototype_new)."""
    n = min(prototype_old.shape[0], prototype_new.shape[0])
    old = prototype_old[:n]                    # static truncation, as in the reference
    new = prototype_new[:n]
    d = old.shape[1]
    assert new.shape[1] == d, "embedding sizes must match"

    if cast_to_bf16 and old.dtype == jnp.float32:
        old = old.astype(jnp.bfloat16)
        new = new.astype(jnp.bfloat16)

    if n <= tile:
        tm = tn = n                            # single tile == full array (no (8,128) constraint)
        n_pad = n
    else:
        tm = tn = tile                         # tile is a multiple of (8, 128)
        n_pad = ((n + tile - 1) // tile) * tile
    assert tm == tn, "diagonal extraction from the MXU output requires square tiles"
    has_padding = n_pad != n

    if has_padding:
        old = jnp.pad(old, ((0, n_pad - n), (0, 0)))
    # MXU-native RHS layout: one transpose (+ one pad) outside the kernel.
    new_t = jnp.transpose(new)                 # (D, n)
    if has_padding:
        new_t = jnp.pad(new_t, ((0, 0), (0, n_pad - n)))

    grid = (n_pad // tm, n_pad // tn)
    itemsize = old.dtype.itemsize

    kernel = functools.partial(_cpl_kernel, tau=float(tau), n_valid=int(n),
                               has_padding=bool(has_padding))

    per_row = pl.pallas_call(
        kernel,
        out_shape=jax.ShapeDtypeStruct((n_pad, 1), jnp.float32),
        grid=grid,
        in_specs=[
            pl.BlockSpec((tm, d), lambda i, j: (i, 0)),   # old prototype rows (resident over j)
            pl.BlockSpec((d, tn), lambda i, j: (0, j)),   # new prototypes^T column tiles
        ],
        out_specs=pl.BlockSpec((tm, 1), lambda i, j: (i, 0)),
        scratch_shapes=[
            pltpu.VMEM((tm, 1), jnp.float32),             # running max
            pltpu.VMEM((tm, 1), jnp.float32),             # running sum-of-exp
            pltpu.VMEM((tm, 1), jnp.float32),             # positive (diagonal) term
        ],
        compiler_params=pltpu.CompilerParams(
            dimension_semantics=("parallel", "arbitrary"),
        ),
        cost_estimate=pl.CostEstimate(
            flops=2 * n_pad * n_pad * d,
            transcendentals=n_pad * n_pad,
            bytes_accessed=old.size * itemsize
                           + grid[0] * new_t.size * itemsize
                           + n_pad * 4,
        ),
    )(old, new_t)

    return jnp.mean(per_row[:n, 0])


def _reference_loss(prototype_old, prototype_new, tau):
    """NumPy (f64) transcription of the PyTorch module."""
    n = min(prototype_old.shape[0], prototype_new.shape[0])
    po = np.asarray(prototype_old, dtype=np.float64)[:n]
    pn = np.asarray(prototype_new, dtype=np.float64)[:n]
    sim = po @ pn.T * tau
    pos = -np.diag(sim)
    simz = sim * (1.0 - np.eye(n))
    mx = simz.max(axis=1, keepdims=True)
    neg = (mx + np.log(np.exp(simz - mx).sum(axis=1, keepdims=True)))[:, 0]
    return float((pos + neg).mean())


if __name__ == "__main__":
    tau = 0.5
    key = jax.random.PRNGKey(0)
    k1, k2, k3, k4, k5, k6 = jax.random.split(key, 6)

    # Test 1: small, mismatched prototype counts (truncation branch, single full-array tile).
    proto_old = jax.random.normal(k1, (12, 32), dtype=jnp.float32)
    proto_new = jax.random.normal(k2, (8, 32), dtype=jnp.float32)
    loss = jax.block_until_ready(contrastive_prototype_loss(proto_old, proto_new, tau))
    ref = _reference_loss(np.array(proto_old), np.array(proto_new), tau)
    assert abs(float(loss) - ref) < 1e-3 * max(1.0, abs(ref)), (float(loss), ref)

    # Test 2: tiled + padded path (n=300 -> padded to 512, grid (2, 2), fast + masked blocks).
    proto_old2 = jax.random.normal(k3, (300, 64), dtype=jnp.float32)
    proto_new2 = jax.random.normal(k4, (300, 64), dtype=jnp.float32)
    loss2 = jax.block_until_ready(contrastive_prototype_loss(proto_old2, proto_new2, tau))
    ref2 = _reference_loss(np.array(proto_old2), np.array(proto_new2), tau)
    assert abs(float(loss2) - ref2) < 1e-3 * max(1.0, abs(ref2)), (float(loss2), ref2)

    # Test 3: bf16 inputs, tiled path without padding (n=512 -> grid (2, 2)), f32 accumulation.
    proto_old3 = jax.random.normal(k5, (512, 32), dtype=jnp.float32).astype(jnp.bfloat16)
    proto_new3 = jax.random.normal(k6, (512, 32), dtype=jnp.float32).astype(jnp.bfloat16)
    loss3 = jax.block_until_ready(contrastive_prototype_loss(proto_old3, proto_new3, tau))
    ref3 = _reference_loss(np.array(proto_old3.astype(jnp.float32)),
                           np.array(proto_new3.astype(jnp.float32)), tau)
    assert abs(float(loss3) - ref3) < 2e-3 * max(1.0, abs(ref3)), (float(loss3), ref3)

    print("KERNEL_OK")
</pallas_src>

<mosaic_0001>
module attributes {stable_mosaic.version = 11 : i64} {
  func.func @_cpl_kernel(%arg0: i32, %arg1: i32, %arg2: memref<8x32xf32, #tpu.memory_space<vmem>>, %arg3: memref<32x8xf32, #tpu.memory_space<vmem>>, %arg4: memref<8x1xf32, #tpu.memory_space<vmem>>, %arg5: memref<8x1xf32, #tpu.memory_space<vmem>>, %arg6: memref<8x1xf32, #tpu.memory_space<vmem>>, %arg7: memref<8x1xf32, #tpu.memory_space<vmem>>) attributes {dimension_semantics = [#tpu.dimension_semantics<parallel>, #tpu.dimension_semantics<arbitrary>], iteration_bounds = array<i64: 1, 1>, scalar_prefetch = 0 : i64, scratch_operands = 3 : i64, tpu.core_type = #tpu.core_type<tc>, window_params = [{transform_indices = @transform_0, window_bounds = array<i64: 8, 32>}, {transform_indices = @transform_1, window_bounds = array<i64: 32, 8>}, {transform_indices = @transform_2, window_bounds = array<i64: 8, 1>}]} {
    %c0_i32 = arith.constant 0 : i32
    %0 = arith.cmpi eq, %arg1, %c0_i32 : i32
    %1 = arith.extui %0 : i1 to i32
    %c0_i32_0 = arith.constant 0 : i32
    %2 = arith.cmpi ne, %1, %c0_i32_0 : i32
    scf.if %2 {
      %cst_9 = arith.constant -1.000000e+30 : f32
      %17 = vector.broadcast %cst_9 : f32 to vector<8x1xf32>
      %c0_10 = arith.constant 0 : index
      %c0_11 = arith.constant 0 : index
      %18 = vector.load %arg5[%c0_10, %c0_11] : memref<8x1xf32, #tpu.memory_space<vmem>>, vector<8x1xf32>
      tpu.vector_store %arg5[%c0_10, %c0_11], %17 {strides = array<i32>} : memref<8x1xf32, #tpu.memory_space<vmem>>, vector<8x1xf32>,
      %cst_12 = arith.constant 0.000000e+00 : f32
      %19 = vector.broadcast %cst_12 : f32 to vector<8x1xf32>
      %c0_13 = arith.constant 0 : index
      %c0_14 = arith.constant 0 : index
      %20 = vector.load %arg6[%c0_13, %c0_14] : memref<8x1xf32, #tpu.memory_space<vmem>>, vector<8x1xf32>
      tpu.vector_store %arg6[%c0_13, %c0_14], %19 {strides = array<i32>} : memref<8x1xf32, #tpu.memory_space<vmem>>, vector<8x1xf32>,
      %cst_15 = arith.constant 0.000000e+00 : f32
      %21 = vector.broadcast %cst_15 : f32 to vector<8x1xf32>
      %c0_16 = arith.constant 0 : index
      %c0_17 = arith.constant 0 : index
      %22 = vector.load %arg7[%c0_16, %c0_17] : memref<8x1xf32, #tpu.memory_space<vmem>>, vector<8x1xf32>
      tpu.vector_store %arg7[%c0_16, %c0_17], %21 {strides = array<i32>} : memref<8x1xf32, #tpu.memory_space<vmem>>, vector<8x1xf32>,
    } else {
    }
    %c0 = arith.constant 0 : index
    %c0_1 = arith.constant 0 : index
    %3 = vector.load %arg2[%c0, %c0_1] : memref<8x32xf32, #tpu.memory_space<vmem>>, vector<8x32xf32>
    %c0_2 = arith.constant 0 : index
    %c0_3 = arith.constant 0 : index
    %4 = vector.load %arg3[%c0_2, %c0_3] : memref<32x8xf32, #tpu.memory_space<vmem>>, vector<32x8xf32>
    %cst = arith.constant dense<0.000000e+00> : vector<8x8xf32>
    %5 = tpu.matmul %3, %4, %cst {dimension_numbers = #tpu.dot_dimension_numbers<[1], [0], [0], [1], [0, 0, 1, 1], [], []>} : vector<8x32xf32>, vector<32x8xf32>, vector<8x8xf32> -> vector<8x8xf32>
    %cst_4 = arith.constant 5.000000e-01 : f32
    %6 = vector.broadcast %cst_4 : f32 to vector<8x8xf32>
    %7 = arith.mulf %5, %6 : vector<8x8xf32>
    %8 = arith.cmpi eq, %arg0, %arg1 : i32
    %9 = arith.extui %8 : i1 to i32
    %c0_i32_5 = arith.constant 0 : i32
    %10 = arith.cmpi ne, %9, %c0_i32_5 : i32
    scf.if %10 {
      %17 = tpu.iota {dimensions = array<i32: 0>} : vector<8x8xi32>
      %18 = tpu.iota {dimensions = array<i32: 1>} : vector<8x8xi32>
      %19 = arith.cmpi eq, %arg0, %arg1 : i32
      %20 = arith.extui %19 : i1 to i32
      %c0_i32_9 = arith.constant 0 : i32
      %21 = arith.cmpi ne, %20, %c0_i32_9 : i32
      scf.if %21 {
        %44 = arith.cmpi eq, %17, %18 : vector<8x8xi32>
        %cst_21 = arith.constant 0.000000e+00 : f32
        %45 = vector.broadcast %cst_21 : f32 to vector<8x8xf32>
        %46 = arith.select %44, %7, %45 : vector<8x8xi1>, vector<8x8xf32>
        %cst_22 = arith.constant dense<0.000000e+00> : vector<8xf32>
        %47 = vector.multi_reduction <add>, %46, %cst_22 [1] : vector<8x8xf32> to vector<8xf32>
        %48 = vector.shape_cast %47 : vector<8xf32> to vector<8x1xf32>
        %c0_23 = arith.constant 0 : index
        %c0_24 = arith.constant 0 : index
        %49 = vector.load %arg7[%c0_23, %c0_24] : memref<8x1xf32, #tpu.memory_space<vmem>>, vector<8x1xf32>
        tpu.vector_store %arg7[%c0_23, %c0_24], %48 {strides = array<i32>} : memref<8x1xf32, #tpu.memory_space<vmem>>, vector<8x1xf32>,
      } else {
      }
      %22 = arith.cmpi eq, %arg0, %arg1 : i32
      %23 = arith.cmpi eq, %17, %18 : vector<8x8xi32>
      %24 = vector.broadcast %22 : i1 to vector<8x8xi1>
      %25 = arith.andi %24, %23 : vector<8x8xi1>
      %cst_10 = arith.constant 0.000000e+00 : f32
      %26 = vector.broadcast %cst_10 : f32 to vector<8x8xf32>
      %27 = arith.select %25, %26, %7 : vector<8x8xi1>, vector<8x8xf32>
      %c0_11 = arith.constant 0 : index
      %c0_12 = arith.constant 0 : index
      %28 = vector.load %arg5[%c0_11, %c0_12] : memref<8x1xf32, #tpu.memory_space<vmem>>, vector<8x1xf32>
      %cst_13 = arith.constant dense<0xFF800000> : vector<8xf32>
      %29 = vector.multi_reduction <maximumf>, %27, %cst_13 [1] : vector<8x8xf32> to vector<8xf32>
      %30 = vector.shape_cast %29 : vector<8xf32> to vector<8x1xf32>
      %31 = arith.maximumf %28, %30 : vector<8x1xf32>
      %32 = arith.subf %28, %31 : vector<8x1xf32>
      %33 = math.exp %32 : vector<8x1xf32>
      %c0_14 = arith.constant 0 : index
      %c0_15 = arith.constant 0 : index
      %34 = vector.load %arg6[%c0_14, %c0_15] : memref<8x1xf32, #tpu.memory_space<vmem>>, vector<8x1xf32>
      %35 = arith.mulf %33, %34 : vector<8x1xf32>
      %36 = vector.broadcast %31 : vector<8x1xf32> to vector<8x8xf32>
      %37 = arith.subf %27, %36 : vector<8x8xf32>
      %38 = math.exp %37 : vector<8x8xf32>
      %cst_16 = arith.constant dense<0.000000e+00> : vector<8xf32>
      %39 = vector.multi_reduction <add>, %38, %cst_16 [1] : vector<8x8xf32> to vector<8xf32>
      %40 = vector.shape_cast %39 : vector<8xf32> to vector<8x1xf32>
      %41 = arith.addf %35, %40 : vector<8x1xf32>
      %c0_17 = arith.constant 0 : index
      %c0_18 = arith.constant 0 : index
      %42 = vector.load %arg6[%c0_17, %c0_18] : memref<8x1xf32, #tpu.memory_space<vmem>>, vector<8x1xf32>
      tpu.vector_store %arg6[%c0_17, %c0_18], %41 {strides = array<i32>} : memref<8x1xf32, #tpu.memory_space<vmem>>, vector<8x1xf32>,
      %c0_19 = arith.constant 0 : index
      %c0_20 = arith.constant 0 : index
      %43 = vector.load %arg5[%c0_19, %c0_20] : memref<8x1xf32, #tpu.memory_space<vmem>>, vector<8x1xf32>
      tpu.vector_store %arg5[%c0_19, %c0_20], %31 {strides = array<i32>} : memref<8x1xf32, #tpu.memory_space<vmem>>, vector<8x1xf32>,
    } else {
    }
    %true = arith.constant true
    %11 = arith.xori %8, %true : i1
    %12 = arith.extui %11 : i1 to i32
    %c0_i32_6 = arith.constant 0 : i32
    %13 = arith.cmpi ne, %12, %c0_i32_6 : i32
    scf.if %13 {
      %c0_9 = arith.constant 0 : index
      %c0_10 = arith.constant 0 : index
      %17 = vector.load %arg5[%c0_9, %c0_10] : memref<8x1xf32, #tpu.memory_space<vmem>>, vector<8x1xf32>
      %cst_11 = arith.constant dense<0xFF800000> : vector<8xf32>
      %18 = vector.multi_reduction <maximumf>, %7, %cst_11 [1] : vector<8x8xf32> to vector<8xf32>
      %19 = vector.shape_cast %18 : vector<8xf32> to vector<8x1xf32>
      %20 = arith.maximumf %17, %19 : vector<8x1xf32>
      %21 = arith.subf %17, %20 : vector<8x1xf32>
      %22 = math.exp %21 : vector<8x1xf32>
      %c0_12 = arith.constant 0 : index
      %c0_13 = arith.constant 0 : index
      %23 = vector.load %arg6[%c0_12, %c0_13] : memref<8x1xf32, #tpu.memory_space<vmem>>, vector<8x1xf32>
      %24 = arith.mulf %22, %23 : vector<8x1xf32>
      %25 = vector.broadcast %20 : vector<8x1xf32> to vector<8x8xf32>
      %26 = arith.subf %7, %25 : vector<8x8xf32>
      %27 = math.exp %26 : vector<8x8xf32>
      %cst_14 = arith.constant dense<0.000000e+00> : vector<8xf32>
      %28 = vector.multi_reduction <add>, %27, %cst_14 [1] : vector<8x8xf32> to vector<8xf32>
      %29 = vector.shape_cast %28 : vector<8xf32> to vector<8x1xf32>
      %30 = arith.addf %24, %29 : vector<8x1xf32>
      %c0_15 = arith.constant 0 : index
      %c0_16 = arith.constant 0 : index
      %31 = vector.load %arg6[%c0_15, %c0_16] : memref<8x1xf32, #tpu.memory_space<vmem>>, vector<8x1xf32>
      tpu.vector_store %arg6[%c0_15, %c0_16], %30 {strides = array<i32>} : memref<8x1xf32, #tpu.memory_space<vmem>>, vector<8x1xf32>,
      %c0_17 = arith.constant 0 : index
      %c0_18 = arith.constant 0 : index
      %32 = vector.load %arg5[%c0_17, %c0_18] : memref<8x1xf32, #tpu.memory_space<vmem>>, vector<8x1xf32>
      tpu.vector_store %arg5[%c0_17, %c0_18], %20 {strides = array<i32>} : memref<8x1xf32, #tpu.memory_space<vmem>>, vector<8x1xf32>,
    } else {
    }
    %c0_i32_7 = arith.constant 0 : i32
    %14 = arith.cmpi eq, %arg1, %c0_i32_7 : i32
    %15 = arith.extui %14 : i1 to i32
    %c0_i32_8 = arith.constant 0 : i32
    %16 = arith.cmpi ne, %15, %c0_i32_8 : i32
    scf.if %16 {
      %c0_9 = arith.constant 0 : index
      %c0_10 = arith.constant 0 : index
      %17 = vector.load %arg5[%c0_9, %c0_10] : memref<8x1xf32, #tpu.memory_space<vmem>>, vector<8x1xf32>
      %c0_11 = arith.constant 0 : index
      %c0_12 = arith.constant 0 : index
      %18 = vector.load %arg6[%c0_11, %c0_12] : memref<8x1xf32, #tpu.memory_space<vmem>>, vector<8x1xf32>
      %19 = math.log %18 : vector<8x1xf32>
      %20 = arith.addf %17, %19 : vector<8x1xf32>
      %c0_13 = arith.constant 0 : index
      %c0_14 = arith.constant 0 : index
      %21 = vector.load %arg7[%c0_13, %c0_14] : memref<8x1xf32, #tpu.memory_space<vmem>>, vector<8x1xf32>
      %22 = arith.subf %20, %21 : vector<8x1xf32>
      %c0_15 = arith.constant 0 : index
      %c0_16 = arith.constant 0 : index
      %23 = vector.load %arg4[%c0_15, %c0_16] : memref<8x1xf32, #tpu.memory_space<vmem>>, vector<8x1xf32>
      tpu.vector_store %arg4[%c0_15, %c0_16], %22 {strides = array<i32>} : memref<8x1xf32, #tpu.memory_space<vmem>>, vector<8x1xf32>,
    } else {
    }
    return
  }
  func.func @transform_0(%arg0: i32, %arg1: i32) -> (i32, i32) {
    %c0_i32 = arith.constant 0 : i32
    %c0_i32_0 = arith.constant 0 : i32
    return %arg0, %c0_i32 : i32, i32
  }
  func.func @transform_1(%arg0: i32, %arg1: i32) -> (i32, i32) {
    %c0_i32 = arith.constant 0 : i32
    %c0_i32_0 = arith.constant 0 : i32
    return %c0_i32, %arg1 : i32, i32
  }
  func.func @transform_2(%arg0: i32, %arg1: i32) -> (i32, i32) {
    %c0_i32 = arith.constant 0 : i32
    %c0_i32_0 = arith.constant 0 : i32
    return %arg0, %c0_i32 : i32, i32
  }
}

</mosaic_0001>

<bundles_post_ra>
// kernel: tpu_custom_call.1
= control target key start
LH: loop header
LB: loop body
LE: loop exit
PB: predicated region body
PF: predicated region fallthrough
CT: control target
= control target key end

     0   :  { %vm15_vm0 = vcmask 7168   ;;  %v221_v0 = vmov 0.0|0.0   ;;  %v222_v4 = vmov 0.0   ;;  %vm223_vm1 = vmmov 0   ;;  %s269_s1 = inlined_call_operand.vmem [shape: f32[32,8], index: 1, kind: input, shape index: {}]   ;;  %s270_s0 = inlined_call_operand.vmem [shape: f32[8,32], index: 0, kind: input, shape index: {}]   ;;  %s271_s2 = inlined_call_operand.vmem [shape: f32[8,1], index: 2, kind: output, shape index: {}]  }
   0x1   :  { %203 = vmatprep.subr.bf16.mxu0 %v221_v0  ;;  %v20_v1 = vld [vmem:[%s269_s1] sm:$0xff]  ;;  %v21_v2 = vld [vmem:[%s269_s1 + $0x8] sm:$0xff]  ;;  %v22_v3 = vld [vmem:[%s269_s1 + $0x10] sm:$0xff]  ;;  %17 = vst.msk [vmem:[#allocation3] sm:$0xff] %vm15_vm0, %v222_v4  ;;  %200 = vmatprep.mubr.msk.f32.mxu0 %vm223_vm1, %v222_v4  ;;  %vm24_vm2 = vcmask 261120   ;;  %v103_v10 = vlaneseq  ;;  %vm109_vm4 = vcmask 64512  }
   0x2   :  { %18 = vst.msk [vmem:[#allocation4] sm:$0xff] %vm15_vm0, %v222_v4  ;;  %v204_v5 = vpack.c.bf16 %v21_v2, %v20_v1  ;;  %v23_v6 = vld [vmem:[%s269_s1 + $0x18] sm:$0xff]  ;;  %v19_v8 = vld [vmem:[%s270_s0] sm:$0xff]  ;;  %v224_v9 = vmov -1e+30   ;;  %v225_v19 = vmov 0  }
   0x3   :  { %v207_v7 = vpack.c.bf16 %v23_v6, %v22_v3  ;;  %16 = vst.msk [vmem:[#allocation2] sm:$0xff] %vm15_vm0, %v224_v9  ;;  %v104_v11 = vshrl.u32 %v103_v10, 7  ;;  %v106_v12 = vand.u32 127, %v103_v10  ;;  %214 = vset.pattern.permute.xlu0 %v225_v19 }
   0x4   :  { %205 = vmatpush3.bf16.msra.mxu0 %v204_v5 }
   0x5   :  { %206 = vmatprep.subr.bf16.mxu0 %v221_v0  ;;  %vm107_vm3 = vcmp.eq.s32.totalorder %v104_v11, %v106_v12 }
   0x8   :  { %208 = vmatpush3.bf16.msra.mxu0 %v207_v7  ;;  %v124_v32 = vld [vmem:[#allocation3] sm:$0xff] }
   0xa   :  { %v116_v20 = vld [vmem:[#allocation2] sm:$0xff] }
   0xb   :  { %201 = vmatmul.mubr.msk.f32.vlgmr.msra.gmra.mrb[0].mxu0 %vm24_vm2, %v19_v8 }
  0xde   :  { %v94_v13 = vpop.f32.mrb[0].mxu0 }
  0xdf   :  { %v98_v14 = vmul.f32 0.5, %v94_v13  ;;  %v202_v15 = vpop.f32.mrb[1].mxu0 }
  0xe1   :  { %v115_v16 = vsel %vm107_vm3, 0.0, %v98_v14  ;;  %v108_v17 = vsel %vm107_vm3, %v98_v14, 0.0 }
  0xe2   :  { %v117_v18 = vsel %vm109_vm4, %v115_v16, -inf  ;;  %v110_v29 = vsel %vm109_vm4, %v108_v17, 0.0 }
  0xe3   :  { %118 = vmax.xlane.f32.xlu0 %v117_v18 }
 0x170   :  { %v119_v21 = vpop.xlane.xlu0 %118 }
 0x171   :  { %v120_v22 = vmax.f32 %v116_v20, %v119_v21 }
 0x173   :  { %v121_v23 = vsub.f32 %v116_v20, %v120_v22  ;;  %139 = vst.msk [vmem:[#allocation2] sm:$0xff] %vm15_vm0, %v120_v22  ;;  %128 = vperm.xlu0 %214, %v120_v22  }
 0x175   :  { %v122_v30 = vmul.f32 1.442695, %v121_v23 }
 0x17a   :  { %v173_v40 = vld [vmem:[#allocation2] sm:$0xff] }
 0x1f2   :  { %v129_v24 = vpop.permute.xlu0 %128 }
 0x1f3   :  { %v131_v25 = vsub.f32 %v115_v16, %v129_v24 }
 0x1f5   :  { %v132_v26 = vmul.f32 1.442695, %v131_v25 }
 0x1f7   :  { %215 = vpow2.f32 %v132_v26 }
 0x1f8   :  { %217 = vpow2.f32 %v122_v30 }
 0x201   :  { %v216_v27 = vpop.eup %215 }
 0x202   :  { %v134_v28 = vsel %vm109_vm4, %v216_v27, 0.0  ;;  %v218_v31 = vpop.eup %217 }
 0x203   :  { %135 = vadd.xlane.f32.xlu1 %v134_v28  ;;  %v125_v33 = vmul.f32 %v218_v31, %v124_v32 }
 0x207   :  { %111 = vadd.xlane.f32.xlu1 %v110_v29 }
 0x290   :  { %v136_v34 = vpop.xlane.xlu1 %135 }
 0x291   :  { %v137_v35 = vadd.f32 %v136_v34, %v125_v33 }
 0x293   :  { %138 = vst.msk [vmem:[#allocation3] sm:$0xff] %vm15_vm0, %v137_v35 }
 0x294   :  { %v112_v36 = vpop.xlane.xlu1 %111 }
 0x295   :  { %114 = vst.msk [vmem:[#allocation4] sm:$0xff] %vm15_vm0, %v112_v36 }
 0x29a   :  { %v174_v37 = vld [vmem:[#allocation3] sm:$0xff] }
 0x29b   :  { %219 = vlog2.f32 %v174_v37 }
 0x29c   :  { %v178_v42 = vld [vmem:[#allocation4] sm:$0xff] }
 0x2a5   :  { %v220_v38 = vpop.eup %219 }
 0x2a6   :  { %v176_v39 = vmul.f32 0.6931472, %v220_v38 }
 0x2a8   :  { %v177_v41 = vadd.f32 %v176_v39, %v173_v40 }
 0x2aa   :  { %v179_v43 = vsub.f32 %v177_v41, %v178_v42 }
 0x2ac   :  { %181 = vst.msk [vmem:[%s271_s2] sm:$0xff] %vm15_vm0, %v179_v43 }

</bundles_post_ra>
